<compile_context>
chip_gen: v5e
topology: v5e:2x2
jax: 0.10.0
libtpu: 0.0.40
codegen_flags: <defaults>
</compile_context>

<pallas_src>
import jax
import jax.numpy as jnp
from jax.experimental import pallas as pl
from jax.experimental.pallas import tpu as pltpu


# ------------------------------- tunables ----------------------------------
_SMALL_TOTAL_BYTES = 2 << 20      # below this (raw input bytes): VMEM fast path
_VMEM_BUDGET_BYTES = 8 << 20      # padded VMEM budget (safe under v5e's 16 MiB)
_MIN_CHUNK_BYTES = 1 << 20        # target >= ~1 MiB per DMA chunk
_MAX_CHUNKS_PER_INPUT = 8         # v5e saturates with fewer; harmless upper bound
_MAX_INFLIGHT = 16                # sliding-window cap on outstanding DMAs/group
_NUM_ISSUE_GROUPS = 2             # grid steps; on v7x = one per TensorCore


def _round_up(x, m):
    return (x + m - 1) // m * m


def _padded_vmem_bytes(shape, itemsize):
    """Conservative VMEM footprint estimate incl. (8,128) lane/sublane padding."""
    *major, s, l = shape
    n_major = 1
    for d in major:
        n_major *= int(d)
    return n_major * _round_up(max(int(s), 1), 8) * _round_up(max(int(l), 1), 128) * itemsize


def _channel_offsets(channel_sizes):
    offs, off = [], 0
    for c in channel_sizes:
        offs.append(off)
        off += c
    return offs


# --------------------- small-tensor path: VMEM stores -----------------------
def _make_vmem_concat_kernel(channel_sizes):
    offsets = _channel_offsets(channel_sizes)
    n = len(channel_sizes)

    def kernel(*refs):
        in_refs = refs[:n]
        o_ref = refs[n]
        for x_ref, c, start in zip(in_refs, channel_sizes, offsets):
            if c > 0:
                o_ref[:, start:start + c, :, :] = x_ref[...]

    return kernel


# --------------------- large-tensor path: HBM->HBM DMA ----------------------
def _build_copy_plan(batch, channel_sizes, h, w, itemsize):
    """Static plan: list of (sem_idx, input_idx, b0, b_len, c0, c_len)."""
    offsets = _channel_offsets(channel_sizes)
    plan = []
    for ii, (c, c0) in enumerate(zip(channel_sizes, offsets)):
        if c == 0:
            continue
        in_bytes = batch * c * h * w * itemsize
        k = int(min(_MAX_CHUNKS_PER_INPUT, batch,
                    max(1, in_bytes // _MIN_CHUNK_BYTES)))
        base, rem = divmod(batch, k)
        b0 = 0
        for j in range(k):
            blen = base + (1 if j < rem else 0)
            if blen > 0:
                plan.append((ii, b0, blen, c0, c))
            b0 += blen
    return [(j,) + entry for j, entry in enumerate(plan)]


def _split_plan(plan, h, w, itemsize, n_groups):
    """Greedy byte-balanced split of the copy plan into issue groups."""
    groups = [[] for _ in range(n_groups)]
    loads = [0] * n_groups
    for copy in plan:
        _, _, _, blen, _, c = copy
        nbytes = blen * c * h * w * itemsize
        g = loads.index(min(loads))
        groups[g].append(copy)
        loads[g] += nbytes
    return groups


def _make_dma_concat_kernel(groups, n_inputs):
    def kernel(*refs):
        in_refs = refs[:n_inputs]
        o_ref = refs[n_inputs]
        sem = refs[n_inputs + 1]          # DMA semaphores, one per copy
        pid = pl.program_id(0)

        for g, group in enumerate(groups):
            if not group:
                continue

            @pl.when(pid == g)
            def _(group=group):
                cps = []
                for k, (j, ii, b0, blen, c0, c) in enumerate(group):
                    # Sliding window: keep at most _MAX_INFLIGHT DMAs outstanding.
                    if k >= _MAX_INFLIGHT:
                        cps[k - _MAX_INFLIGHT].wait()
                    cp = pltpu.make_async_copy(
                        in_refs[ii].at[b0:b0 + blen],                 # contiguous src
                        o_ref.at[b0:b0 + blen, c0:c0 + c, :, :],      # channel slab dst
                        sem.at[j],
                    )
                    cp.start()
                    cps.append(cp)
                for cp in cps[max(0, len(cps) - _MAX_INFLIGHT):]:
                    cp.wait()

    return kernel


# --------------------------------- wrapper ----------------------------------
def concat_dim1(*inputs, force_dma=False):
    """Pallas equivalent of torch.cat(inputs, dim=1) for 4-D NCHW tensors."""
    assert len(inputs) >= 1
    b, _, h, w = inputs[0].shape
    dtype = inputs[0].dtype
    for x in inputs:
        assert x.ndim == 4 and x.shape[0] == b and x.shape[2] == h and x.shape[3] == w
        assert x.dtype == dtype

    # Nothing to concatenate: avoid a pointless full read+write of the tensor.
    if len(inputs) == 1 and not force_dma:
        return inputs[0]

    n = len(inputs)
    channel_sizes = tuple(int(x.shape[1]) for x in inputs)
    c_out = sum(channel_sizes)
    itemsize = jnp.dtype(dtype).itemsize
    out_shape = (b, c_out, h, w)

    total_bytes = sum(int(x.size) * itemsize for x in inputs)
    padded_bytes = (sum(_padded_vmem_bytes(x.shape, itemsize) for x in inputs)
                    + _padded_vmem_bytes(out_shape, itemsize))

    # Pure memory op: read every input once, write the output once.
    cost = pl.CostEstimate(flops=0, transcendentals=0,
                           bytes_accessed=2 * total_bytes)

    use_vmem = (not force_dma
                and total_bytes <= _SMALL_TOTAL_BYTES
                and padded_bytes <= _VMEM_BUDGET_BYTES)

    if use_vmem:
        # Small-tensor fast path: single grid step, everything resident in VMEM,
        # plain stores into the output channel slabs (no per-DMA fixed cost).
        return pl.pallas_call(
            _make_vmem_concat_kernel(channel_sizes),
            out_shape=jax.ShapeDtypeStruct(out_shape, dtype),
            cost_estimate=cost,
        )(*inputs)

    # Large-tensor path: pure HBM->HBM DMA, zero VMEM residency. Copies are
    # chunked along batch for DMA concurrency and sharded across grid steps
    # (one per TensorCore on v7x via dimension_semantics=("parallel",)).
    plan = _build_copy_plan(b, channel_sizes, h, w, itemsize)
    n_groups = _NUM_ISSUE_GROUPS if len(plan) >= 2 else 1
    groups = _split_plan(plan, h, w, itemsize, n_groups)
    num_copies = max(1, len(plan))

    return pl.pallas_call(
        _make_dma_concat_kernel(groups, n),
        out_shape=jax.ShapeDtypeStruct(out_shape, dtype),
        grid=(n_groups,),
        in_specs=[pl.BlockSpec(memory_space=pl.ANY)] * n,
        out_specs=pl.BlockSpec(memory_space=pl.ANY),
        scratch_shapes=[pltpu.SemaphoreType.DMA((num_copies,))],
        compiler_params=pltpu.CompilerParams(
            dimension_semantics=("parallel",)),
        cost_estimate=cost,
    )(*inputs)


if __name__ == "__main__":
    key = jax.random.PRNGKey(0)
    k1, k2, k3 = jax.random.split(key, 3)

    # Small NCHW inputs with differing channel counts, matching torch.cat(dim=1).
    x1 = jax.random.normal(k1, (2, 4, 16, 16), dtype=jnp.float32)
    x2 = jax.random.normal(k2, (2, 3, 16, 16), dtype=jnp.float32)
    x3 = jax.random.normal(k3, (2, 5, 16, 16), dtype=jnp.float32)

    ref = jnp.concatenate([x1, x2, x3], axis=1)

    # 1) Small-tensor fast path (single-step VMEM kernel).
    out_small = jax.block_until_ready(concat_dim1(x1, x2, x3))
    assert out_small.shape == (2, 12, 16, 16), out_small.shape
    assert out_small.dtype == ref.dtype
    assert jnp.array_equal(out_small, ref), "VMEM-path concat mismatch"

    # 2) Large-tensor path (chunked HBM->HBM DMA), forced at small sizes to
    #    exercise its lowering cheaply.
    out_dma = jax.block_until_ready(concat_dim1(x1, x2, x3, force_dma=True))
    assert jnp.array_equal(out_dma, ref), "DMA-path concat mismatch"

    # 3) n == 1 short-circuit.
    out_single = jax.block_until_ready(concat_dim1(x1))
    assert jnp.array_equal(out_single, x1), "n==1 short-circuit mismatch"

    print("KERNEL_OK")
</pallas_src>

<mosaic_0001>
module attributes {stable_mosaic.version = 11 : i64} {
  func.func @kernel(%arg0: memref<2x4x16x16xf32, #tpu.memory_space<vmem>>, %arg1: memref<2x3x16x16xf32, #tpu.memory_space<vmem>>, %arg2: memref<2x5x16x16xf32, #tpu.memory_space<vmem>>, %arg3: memref<2x12x16x16xf32, #tpu.memory_space<vmem>>) attributes {dimension_semantics = [], scalar_prefetch = 0 : i64, scratch_operands = 0 : i64, tpu.core_type = #tpu.core_type<tc>} {
    %c0 = arith.constant 0 : index
    %c0_0 = arith.constant 0 : index
    %c0_1 = arith.constant 0 : index
    %c0_2 = arith.constant 0 : index
    %0 = vector.load %arg0[%c0, %c0_0, %c0_1, %c0_2] : memref<2x4x16x16xf32, #tpu.memory_space<vmem>>, vector<2x4x16x16xf32>
    %c0_3 = arith.constant 0 : index
    %c0_4 = arith.constant 0 : index
    %c0_5 = arith.constant 0 : index
    %c0_6 = arith.constant 0 : index
    %1 = vector.load %arg3[%c0_3, %c0_4, %c0_5, %c0_6] : memref<2x12x16x16xf32, #tpu.memory_space<vmem>>, vector<2x4x16x16xf32>
    tpu.vector_store %arg3[%c0_3, %c0_4, %c0_5, %c0_6], %0 {strides = array<i32>} : memref<2x12x16x16xf32, #tpu.memory_space<vmem>>, vector<2x4x16x16xf32>,
    %c0_7 = arith.constant 0 : index
    %c0_8 = arith.constant 0 : index
    %c0_9 = arith.constant 0 : index
    %c0_10 = arith.constant 0 : index
    %2 = vector.load %arg1[%c0_7, %c0_8, %c0_9, %c0_10] : memref<2x3x16x16xf32, #tpu.memory_space<vmem>>, vector<2x3x16x16xf32>
    %c0_11 = arith.constant 0 : index
    %c4 = arith.constant 4 : index
    %c0_12 = arith.constant 0 : index
    %c0_13 = arith.constant 0 : index
    %3 = vector.load %arg3[%c0_11, %c4, %c0_12, %c0_13] : memref<2x12x16x16xf32, #tpu.memory_space<vmem>>, vector<2x3x16x16xf32>
    tpu.vector_store %arg3[%c0_11, %c4, %c0_12, %c0_13], %2 {strides = array<i32>} : memref<2x12x16x16xf32, #tpu.memory_space<vmem>>, vector<2x3x16x16xf32>,
    %c0_14 = arith.constant 0 : index
    %c0_15 = arith.constant 0 : index
    %c0_16 = arith.constant 0 : index
    %c0_17 = arith.constant 0 : index
    %4 = vector.load %arg2[%c0_14, %c0_15, %c0_16, %c0_17] : memref<2x5x16x16xf32, #tpu.memory_space<vmem>>, vector<2x5x16x16xf32>
    %c0_18 = arith.constant 0 : index
    %c7 = arith.constant 7 : index
    %c0_19 = arith.constant 0 : index
    %c0_20 = arith.constant 0 : index
    %5 = vector.load %arg3[%c0_18, %c7, %c0_19, %c0_20] : memref<2x12x16x16xf32, #tpu.memory_space<vmem>>, vector<2x5x16x16xf32>
    tpu.vector_store %arg3[%c0_18, %c7, %c0_19, %c0_20], %4 {strides = array<i32>} : memref<2x12x16x16xf32, #tpu.memory_space<vmem>>, vector<2x5x16x16xf32>,
    return
  }
}

</mosaic_0001>

<bundles_post_ra>
// kernel: tpu_custom_call.1
= control target key start
LH: loop header
LB: loop body
LE: loop exit
PB: predicated region body
PF: predicated region fallthrough
CT: control target
= control target key end

     0   :  { %8 = vsyncpa [#allocation3], 0  ;;  %s387_s0 = inlined_call_operand.hbm [shape: f32[2,4,16,16], index: 0, kind: input, shape index: {}]   ;;  %s388_s1 = inlined_call_operand.hbm [shape: f32[2,3,16,16], index: 1, kind: input, shape index: {}]   ;;  %s389_s2 = inlined_call_operand.hbm [shape: f32[2,5,16,16], index: 2, kind: input, shape index: {}]   ;;  %s390_s3 = inlined_call_operand.hbm [shape: f32[2,12,16,16], index: 3, kind: output, shape index: {}]  }
   0x1   :  { %9 = vsyncpa [#allocation6], 0 }
   0x2   :  { %10 = vsyncpa [#allocation4], 0  ;;  %s28_s14 = sshll.u32 %s388_s1, 4  ;;  %s289_s15 = smov [#allocation5]   ;;  %s29_s14 = int_to_ptr.hbm [resolvable:$true] %s28_s14 }
   0x3   :  { %s30_s16 = sshll.u32 %s289_s15, 4  ;;  %s15_s19 = sshll.u32 %s387_s0, 4  ;;  %s31_s16 = int_to_ptr.vmem [resolvable:$true] %s30_s16  ;;  %s16_s19 = int_to_ptr.hbm [resolvable:$true] %s15_s19 }
   0x4   :  { %s290_s20 = smov 128   ;;  %s291_s21 = smov 8  }
   0x5   :  { %36 = dma.hbm_to_vmem [thread:$0]  %s29_s14, 1536, %s31_s16, [#allocation6], %s290_s20, %s290_s20, %s291_s21  }
   0x6   :  { %s292_s22 = smov [#allocation2]   ;;  %s41_s1 = sshll.u32 %s389_s2, 4  ;;  %s42_s1 = int_to_ptr.hbm [resolvable:$true] %s41_s1 }
   0x7   :  { %s17_s23 = sshll.u32 %s292_s22, 4  ;;  %s293_s0 = smov [#allocation7]   ;;  %s18_s23 = int_to_ptr.vmem [resolvable:$true] %s17_s23 }
   0x8   :  { %23 = dma.hbm_to_vmem [thread:$0]  %s16_s19, 2048, %s18_s23, [#allocation3], %s290_s20, %s290_s20, %s291_s21  }
   0x9   :  { %s43_s26 = sshll.u32 %s293_s0, 4  ;;  %s44_s26 = int_to_ptr.vmem [resolvable:$true] %s43_s26 }
   0xa   :  { %49 = dma.hbm_to_vmem [thread:$0]  %s42_s1, 2560, %s44_s26, [#allocation6], %s290_s20, %s290_s20, %s291_s21  }
   0xb   :  { %283 = dma.done.wait [#allocation3], 2048  }
   0xc   :  { %284 = vsyncadd [#allocation3], 4294965248 }
   0xd   :  { %285 = dma.done.wait [#allocation6], 4096  }
   0xe   :  { %286 = vsyncadd [#allocation6], 4294963200  ;;  %vm78_vm0 = vcmask 130048   ;;  %v62_v0 = vld [vmem:[#allocation2] sm:$0xff]  ;;  %v63_v1 = vld [vmem:[#allocation2 + $0x8] sm:$0xff]  ;;  %s294_s2 = smov [#allocation8]  }
   0xf   :  { %v64_v2 = vld [vmem:[#allocation2 + $0x10] sm:$0xff]  ;;  %79 = vst.msk [vmem:[#allocation8] sm:$0xff] %vm78_vm0, %v62_v0  ;;  %v65_v3 = vld [vmem:[#allocation2 + $0x18] sm:$0xff]  ;;  %v66_v4 = vld [vmem:[#allocation2 + $0x20] sm:$0xff]  ;;  %s165_s27 = sshll.u32 %s294_s2, 4  ;;  %s167_s30 = sshll.u32 %s390_s3, 4  ;;  %s166_s27 = int_to_ptr.vmem [resolvable:$true] %s165_s27  ;;  %s168_s30 = int_to_ptr.hbm [resolvable:$true] %s167_s30 }
  0x10   :  { %80 = vst.msk [vmem:[#allocation8 + $0x8] sm:$0xff] %vm78_vm0, %v63_v1  ;;  %v67_v5 = vld [vmem:[#allocation2 + $0x28] sm:$0xff]  ;;  %v68_v6 = vld [vmem:[#allocation2 + $0x30] sm:$0xff]  ;;  %v69_v7 = vld [vmem:[#allocation2 + $0x38] sm:$0xff] }
  0x11   :  { %81 = vst.msk [vmem:[#allocation8 + $0x10] sm:$0xff] %vm78_vm0, %v64_v2  ;;  %v70_v8 = vld [vmem:[#allocation2 + $0x40] sm:$0xff]  ;;  %v71_v9 = vld [vmem:[#allocation2 + $0x48] sm:$0xff]  ;;  %v72_v10 = vld [vmem:[#allocation2 + $0x50] sm:$0xff] }
  0x12   :  { %82 = vst.msk [vmem:[#allocation8 + $0x18] sm:$0xff] %vm78_vm0, %v65_v3  ;;  %v73_v11 = vld [vmem:[#allocation2 + $0x58] sm:$0xff]  ;;  %v74_v12 = vld [vmem:[#allocation2 + $0x60] sm:$0xff]  ;;  %v75_v13 = vld [vmem:[#allocation2 + $0x68] sm:$0xff] }
  0x13   :  { %83 = vst.msk [vmem:[#allocation8 + $0x20] sm:$0xff] %vm78_vm0, %v66_v4  ;;  %v76_v14 = vld [vmem:[#allocation2 + $0x70] sm:$0xff]  ;;  %v77_v15 = vld [vmem:[#allocation2 + $0x78] sm:$0xff]  ;;  %v95_v16 = vld [vmem:[#allocation5] sm:$0xff] }
  0x14   :  { %84 = vst.msk [vmem:[#allocation8 + $0x28] sm:$0xff] %vm78_vm0, %v67_v5  ;;  %v96_v17 = vld [vmem:[#allocation5 + $0x8] sm:$0xff]  ;;  %v97_v18 = vld [vmem:[#allocation5 + $0x10] sm:$0xff]  ;;  %v98_v19 = vld [vmem:[#allocation5 + $0x18] sm:$0xff] }
  0x15   :  { %85 = vst.msk [vmem:[#allocation8 + $0x30] sm:$0xff] %vm78_vm0, %v68_v6  ;;  %v99_v20 = vld [vmem:[#allocation5 + $0x20] sm:$0xff]  ;;  %v100_v21 = vld [vmem:[#allocation5 + $0x28] sm:$0xff]  ;;  %v101_v22 = vld [vmem:[#allocation5 + $0x30] sm:$0xff] }
  0x16   :  { %86 = vst.msk [vmem:[#allocation8 + $0x38] sm:$0xff] %vm78_vm0, %v69_v7  ;;  %v102_v23 = vld [vmem:[#allocation5 + $0x38] sm:$0xff]  ;;  %v103_v24 = vld [vmem:[#allocation5 + $0x40] sm:$0xff]  ;;  %v104_v25 = vld [vmem:[#allocation5 + $0x48] sm:$0xff] }
  0x17   :  { %87 = vst.msk [vmem:[#allocation8 + $0xc0] sm:$0xff] %vm78_vm0, %v70_v8  ;;  %v105_v26 = vld [vmem:[#allocation5 + $0x50] sm:$0xff]  ;;  %v106_v27 = vld [vmem:[#allocation5 + $0x58] sm:$0xff]  ;;  %v120_v28 = vld [vmem:[#allocation7] sm:$0xff] }
  0x18   :  { %88 = vst.msk [vmem:[#allocation8 + $0xc8] sm:$0xff] %vm78_vm0, %v71_v9  ;;  %v121_v29 = vld [vmem:[#allocation7 + $0x8] sm:$0xff]  ;;  %v122_v30 = vld [vmem:[#allocation7 + $0x10] sm:$0xff]  ;;  %v123_v31 = vld [vmem:[#allocation7 + $0x18] sm:$0xff] }
  0x19   :  { %89 = vst.msk [vmem:[#allocation8 + $0xd0] sm:$0xff] %vm78_vm0, %v72_v10  ;;  %v124_v32 = vld [vmem:[#allocation7 + $0x20] sm:$0xff]  ;;  %v125_v33 = vld [vmem:[#allocation7 + $0x28] sm:$0xff]  ;;  %v126_v34 = vld [vmem:[#allocation7 + $0x30] sm:$0xff] }
  0x1a   :  { %90 = vst.msk [vmem:[#allocation8 + $0xd8] sm:$0xff] %vm78_vm0, %v73_v11  ;;  %v127_v35 = vld [vmem:[#allocation7 + $0x38] sm:$0xff]  ;;  %v128_v36 = vld [vmem:[#allocation7 + $0x40] sm:$0xff]  ;;  %v129_v37 = vld [vmem:[#allocation7 + $0x48] sm:$0xff] }
  0x1b   :  { %91 = vst.msk [vmem:[#allocation8 + $0xe0] sm:$0xff] %vm78_vm0, %v74_v12  ;;  %v130_v38 = vld [vmem:[#allocation7 + $0x50] sm:$0xff]  ;;  %v131_v39 = vld [vmem:[#allocation7 + $0x58] sm:$0xff]  ;;  %v132_v40 = vld [vmem:[#allocation7 + $0x60] sm:$0xff] }
  0x1c   :  { %92 = vst.msk [vmem:[#allocation8 + $0xe8] sm:$0xff] %vm78_vm0, %v75_v13  ;;  %v133_v41 = vld [vmem:[#allocation7 + $0x68] sm:$0xff]  ;;  %v134_v42 = vld [vmem:[#allocation7 + $0x70] sm:$0xff]  ;;  %v135_v43 = vld [vmem:[#allocation7 + $0x78] sm:$0xff] }
  0x1d   :  { %93 = vst.msk [vmem:[#allocation8 + $0xf0] sm:$0xff] %vm78_vm0, %v76_v14  ;;  %v136_v44 = vld [vmem:[#allocation7 + $0x80] sm:$0xff]  ;;  %v137_v45 = vld [vmem:[#allocation7 + $0x88] sm:$0xff]  ;;  %v138_v46 = vld [vmem:[#allocation7 + $0x90] sm:$0xff] }
  0x1e   :  { %94 = vst.msk [vmem:[#allocation8 + $0xf8] sm:$0xff] %vm78_vm0, %v77_v15  ;;  %v139_v47 = vld [vmem:[#allocation7 + $0x98] sm:$0xff] }
  0x1f   :  { %108 = vst.msk [vmem:[#allocation8 + $0x40] sm:$0xff] %vm78_vm0, %v95_v16 }
  0x20   :  { %109 = vst.msk [vmem:[#allocation8 + $0x48] sm:$0xff] %vm78_vm0, %v96_v17 }
  0x21   :  { %110 = vst.msk [vmem:[#allocation8 + $0x50] sm:$0xff] %vm78_vm0, %v97_v18 }
  0x22   :  { %111 = vst.msk [vmem:[#allocation8 + $0x58] sm:$0xff] %vm78_vm0, %v98_v19 }
  0x23   :  { %112 = vst.msk [vmem:[#allocation8 + $0x60] sm:$0xff] %vm78_vm0, %v99_v20 }
  0x24   :  { %113 = vst.msk [vmem:[#allocation8 + $0x68] sm:$0xff] %vm78_vm0, %v100_v21 }
  0x25   :  { %114 = vst.msk [vmem:[#allocation8 + $0x100] sm:$0xff] %vm78_vm0, %v101_v22 }
  0x26   :  { %115 = vst.msk [vmem:[#allocation8 + $0x108] sm:$0xff] %vm78_vm0, %v102_v23 }
  0x27   :  { %116 = vst.msk [vmem:[#allocation8 + $0x110] sm:$0xff] %vm78_vm0, %v103_v24 }
  0x28   :  { %117 = vst.msk [vmem:[#allocation8 + $0x118] sm:$0xff] %vm78_vm0, %v104_v25 }
  0x29   :  { %118 = vst.msk [vmem:[#allocation8 + $0x120] sm:$0xff] %vm78_vm0, %v105_v26 }
  0x2a   :  { %119 = vst.msk [vmem:[#allocation8 + $0x128] sm:$0xff] %vm78_vm0, %v106_v27 }
  0x2b   :  { %141 = vst.msk [vmem:[#allocation8 + $0x70] sm:$0xff] %vm78_vm0, %v120_v28 }
  0x2c   :  { %142 = vst.msk [vmem:[#allocation8 + $0x78] sm:$0xff] %vm78_vm0, %v121_v29 }
  0x2d   :  { %143 = vst.msk [vmem:[#allocation8 + $0x80] sm:$0xff] %vm78_vm0, %v122_v30 }
  0x2e   :  { %144 = vst.msk [vmem:[#allocation8 + $0x88] sm:$0xff] %vm78_vm0, %v123_v31 }
  0x2f   :  { %145 = vst.msk [vmem:[#allocation8 + $0x90] sm:$0xff] %vm78_vm0, %v124_v32 }
  0x30   :  { %146 = vst.msk [vmem:[#allocation8 + $0x98] sm:$0xff] %vm78_vm0, %v125_v33 }
  0x31   :  { %147 = vst.msk [vmem:[#allocation8 + $0xa0] sm:$0xff] %vm78_vm0, %v126_v34 }
  0x32   :  { %148 = vst.msk [vmem:[#allocation8 + $0xa8] sm:$0xff] %vm78_vm0, %v127_v35 }
  0x33   :  { %149 = vst.msk [vmem:[#allocation8 + $0xb0] sm:$0xff] %vm78_vm0, %v128_v36 }
  0x34   :  { %150 = vst.msk [vmem:[#allocation8 + $0xb8] sm:$0xff] %vm78_vm0, %v129_v37 }
  0x35   :  { %151 = vst.msk [vmem:[#allocation8 + $0x130] sm:$0xff] %vm78_vm0, %v130_v38 }
  0x36   :  { %152 = vst.msk [vmem:[#allocation8 + $0x138] sm:$0xff] %vm78_vm0, %v131_v39 }
  0x37   :  { %153 = vst.msk [vmem:[#allocation8 + $0x140] sm:$0xff] %vm78_vm0, %v132_v40 }
  0x38   :  { %154 = vst.msk [vmem:[#allocation8 + $0x148] sm:$0xff] %vm78_vm0, %v133_v41 }
  0x39   :  { %155 = vst.msk [vmem:[#allocation8 + $0x150] sm:$0xff] %vm78_vm0, %v134_v42 }
  0x3a   :  { %156 = vst.msk [vmem:[#allocation8 + $0x158] sm:$0xff] %vm78_vm0, %v135_v43 }
  0x3b   :  { %157 = vst.msk [vmem:[#allocation8 + $0x160] sm:$0xff] %vm78_vm0, %v136_v44 }
  0x3c   :  { %158 = vst.msk [vmem:[#allocation8 + $0x168] sm:$0xff] %vm78_vm0, %v137_v45 }
  0x3d   :  { %159 = vst.msk [vmem:[#allocation8 + $0x170] sm:$0xff] %vm78_vm0, %v138_v46 }
  0x3e   :  { %160 = vst.msk [vmem:[#allocation8 + $0x178] sm:$0xff] %vm78_vm0, %v139_v47 }
  0x3f   :  { %173 = dma.vmem_to_hbm [thread:$0]  %s166_s27, 6144, %s168_s30, [#allocation4], %s290_s20, %s290_s20, %s291_s21  }
  0x40   :  { %287 = dma.done.wait [#allocation4], 6144  }
  0x41   :  { %288 = vsyncadd [#allocation4], 4294961152 }
  0x42   :  { %178 = vsyncpa [#allocation3], 1 }
  0x43   :  { %179 = vsyncpa [#allocation6], 1 }
  0x44   :  { %180 = vsyncpa [#allocation4], 1 }

</bundles_post_ra>
